<compile_context>
chip_gen: v6e
topology: v6e:2x2x1
jax: 0.10.0
libtpu: 0.0.40
codegen_flags: <defaults>
</compile_context>

<pallas_src>
import numpy as np
import jax
import jax.numpy as jnp
from jax.experimental import pallas as pl
from jax.experimental.pallas import tpu as pltpu


# ----------------------------------------------------------------------------
# Fused CBAM kernel: one program per batch element.
#   x_ref   : (1, C, HW)   activations (NCHW flattened), spatial on lanes
#   w1t_ref : (Cr, C)      ChannelGate MLP layer 1 weight (PyTorch (out,in) layout)
#   b1_ref  : (Cr, 1)
#   w2t_ref : (C, Cr)      ChannelGate MLP layer 2 weight
#   b2_ref  : (C, 1)
#   bsp_ref : (2, HW, HW)  banded matrices of the 7x7 spatial conv (0: max-map, 1: mean-map)
#   sbn_ref : (2,) SMEM    folded BN(1) of the spatial conv: [scale, bias]
#   o_ref   : (1, C, HW)
# ----------------------------------------------------------------------------
def _cbam_kernel(x_ref, w1t_ref, b1_ref, w2t_ref, b2_ref, bsp_ref, sbn_ref,
                 o_ref):
    x = x_ref[0]                                            # (C, HW) f32

    # ---- ChannelGate: global avg / max pool over spatial (lane reductions) ----
    avg = jnp.mean(x, axis=1, keepdims=True)                # (C, 1)
    mx = jnp.max(x, axis=1, keepdims=True)                  # (C, 1)
    # Shared MLP (Linear C->Cr, ReLU, Linear Cr->C).  mlp(avg)+mlp(max) =
    # W2 (relu(h_avg) + relu(h_max)) + 2 b2 because layer 2 is linear.
    w1t = w1t_ref[...]
    h = (jnp.maximum(jnp.dot(w1t, avg, preferred_element_type=jnp.float32)
                     + b1_ref[...], 0.0)
         + jnp.maximum(jnp.dot(w1t, mx, preferred_element_type=jnp.float32)
                       + b1_ref[...], 0.0))                 # (Cr, 1)
    att = (jnp.dot(w2t_ref[...], h, preferred_element_type=jnp.float32)
           + 2.0 * b2_ref[...])                             # (C, 1)
    x_cg = x * jax.nn.sigmoid(att)                          # lane-broadcast of (C,1)

    # ---- ChannelPool: max / mean over channels (sublane reductions) ----
    cmax = jnp.max(x_cg, axis=0, keepdims=True)             # (1, HW)
    cmean = jnp.mean(x_cg, axis=0, keepdims=True)           # (1, HW)

    # ---- SpatialGate: 7x7 conv (2->1, pad 3) as two MXU matmuls, + BN + sigmoid ----
    conv = (jnp.dot(cmax, bsp_ref[0], preferred_element_type=jnp.float32)
            + jnp.dot(cmean, bsp_ref[1], preferred_element_type=jnp.float32))
    sp_scale = jax.nn.sigmoid(conv * sbn_ref[0] + sbn_ref[1])   # (1, HW)

    # ---- apply spatial gate (sublane broadcast); lane-dense store ----
    o_ref[0] = x_cg * sp_scale


def cbam_pallas(x_flat, params):
    """x_flat: (N, C, H*W) float32 -> (N, C, H*W) float32."""
    N, C, HW = x_flat.shape
    Cr = params["cg_w1t"].shape[0]
    return pl.pallas_call(
        _cbam_kernel,
        out_shape=jax.ShapeDtypeStruct((N, C, HW), jnp.float32),
        grid=(N,),
        in_specs=[
            pl.BlockSpec((1, C, HW), lambda n: (n, 0, 0)),
            pl.BlockSpec((Cr, C), lambda n: (0, 0)),
            pl.BlockSpec((Cr, 1), lambda n: (0, 0)),
            pl.BlockSpec((C, Cr), lambda n: (0, 0)),
            pl.BlockSpec((C, 1), lambda n: (0, 0)),
            pl.BlockSpec((2, HW, HW), lambda n: (0, 0, 0)),
            pl.BlockSpec(memory_space=pltpu.MemorySpace.SMEM),
        ],
        out_specs=pl.BlockSpec((1, C, HW), lambda n: (n, 0, 0)),
        compiler_params=pltpu.CompilerParams(
            dimension_semantics=("parallel",)),
    )(x_flat, params["cg_w1t"], params["cg_b1"], params["cg_w2t"],
      params["cg_b2"], params["sp_B"], params["sp_bn"])


@jax.jit
def cbam_forward(x_nchw, params):
    N, C, H, W = x_nchw.shape
    out_flat = cbam_pallas(x_nchw.reshape(N, C, H * W), params)
    return out_flat.reshape(N, C, H, W)


# ----------------------------------------------------------------------------
# Parameter construction (deterministic, synthetic) + weight preprocessing.
# ----------------------------------------------------------------------------
def _fold_bn(gamma, beta, mean, var, eps=1e-5):
    scale = gamma / jnp.sqrt(var + eps)
    bias = beta - mean * scale
    return scale, bias


def build_spatial_conv_matrices(w_sp, H, W):
    """Fold the 7x7, 2->1 conv (padding=3, no bias) into two (HW, HW) banded
    matrices so the kernel runs it as MXU matmuls (zero padding folded in).

    w_sp layout: [kh, kw, c_in].  (PyTorch Conv2d weight is [1, c_in, kh, kw];
    permute(2, 3, 1) when importing real weights.)
    out_flat = pool_max_flat @ B[0] + pool_mean_flat @ B[1]
    """
    K = w_sp.shape[0]
    pad = (K - 1) // 2
    r = jnp.arange(H)
    i = jnp.arange(H)
    m = jnp.arange(W)
    j = jnp.arange(W)
    kh = r[:, None] - i[None, :] + pad             # (H, H)  indexed [r, i]
    kw = m[:, None] - j[None, :] + pad             # (W, W)  indexed [m, j]
    vh = (kh >= 0) & (kh < K)
    vw = (kw >= 0) & (kw < K)
    khc = jnp.clip(kh, 0, K - 1)
    kwc = jnp.clip(kw, 0, K - 1)
    mask = vh[:, :, None, None] & vw[None, None, :, :]   # (H, H, W, W) [r,i,m,j]
    mats = []
    for c in range(w_sp.shape[2]):
        wg = w_sp[khc[:, :, None, None], kwc[None, None, :, :], c]  # (H,H,W,W)
        b = jnp.where(mask, wg, 0.0)                                # [r, i, m, j]
        b = jnp.transpose(b, (0, 2, 1, 3)).reshape(H * W, H * W)    # [(r,m),(i,j)]
        mats.append(b)
    return jnp.stack(mats, axis=0)                 # (2, HW, HW)


def init_params(key, C, H, W, reduction=16):
    ks = jax.random.split(key, 9)
    Cr = max(C // reduction, 1)
    p = {}
    # ChannelGate MLP: Linear(C, Cr) + b, ReLU, Linear(Cr, C) + b
    # (weights stored in PyTorch nn.Linear (out, in) layout).
    p["cg_w1t"] = 0.2 * jax.random.normal(ks[0], (Cr, C), jnp.float32)
    p["cg_b1"] = 0.1 * jax.random.normal(ks[1], (Cr, 1), jnp.float32)
    p["cg_w2t"] = 0.2 * jax.random.normal(ks[2], (C, Cr), jnp.float32)
    p["cg_b2"] = 0.1 * jax.random.normal(ks[3], (C, 1), jnp.float32)
    # SpatialGate: BasicConv(2, 1, 7, padding=3, bias=False) + BN(1), no ReLU.
    w_sp = 0.1 * jax.random.normal(ks[4], (7, 7, 2), jnp.float32)   # [kh, kw, c]
    p["sp_w"] = w_sp
    p["sp_B"] = build_spatial_conv_matrices(w_sp, H, W)             # (2, HW, HW)
    gamma = 0.5 + jax.random.uniform(ks[5], (1,), jnp.float32)
    beta = 0.1 * jax.random.normal(ks[6], (1,), jnp.float32)
    mean = 0.1 * jax.random.normal(ks[7], (1,), jnp.float32)
    var = 0.5 + jax.random.uniform(ks[8], (1,), jnp.float32)
    s, b = _fold_bn(gamma, beta, mean, var)
    p["sp_bn"] = jnp.array([s[0], b[0]], jnp.float32)               # [scale, bias]
    return p


# ----------------------------------------------------------------------------
# Pure-NumPy float64 reference (mirrors the PyTorch CBAM forward).
# ----------------------------------------------------------------------------
def cbam_reference_np(x, p):
    x = np.asarray(x).astype(np.float64)
    w1t = np.asarray(p["cg_w1t"]).astype(np.float64)
    b1 = np.asarray(p["cg_b1"]).astype(np.float64)[:, 0]
    w2t = np.asarray(p["cg_w2t"]).astype(np.float64)
    b2 = np.asarray(p["cg_b2"]).astype(np.float64)[:, 0]
    w_sp = np.asarray(p["sp_w"]).astype(np.float64)
    bn_s, bn_b = np.asarray(p["sp_bn"]).astype(np.float64)

    N, C, H, W = x.shape
    xf = x.reshape(N, C, H * W)
    avg = xf.mean(axis=2)
    mx = xf.max(axis=2)

    def mlp(v):
        h = np.maximum(v @ w1t.T + b1, 0.0)
        return h @ w2t.T + b2

    att = mlp(avg) + mlp(mx)
    xg = x * (1.0 / (1.0 + np.exp(-att)))[:, :, None, None]

    cmax = xg.max(axis=1)
    cmean = xg.mean(axis=1)
    comp = np.stack([cmax, cmean], axis=1)                   # (N, 2, H, W)
    comp_pad = np.zeros((N, 2, H + 6, W + 6), np.float64)
    comp_pad[:, :, 3:3 + H, 3:3 + W] = comp
    conv = np.zeros((N, H, W), np.float64)
    for kh in range(7):
        for kw in range(7):
            for c in range(2):
                conv += comp_pad[:, c, kh:kh + H, kw:kw + W] * w_sp[kh, kw, c]
    sp = conv * bn_s + bn_b
    return xg * (1.0 / (1.0 + np.exp(-sp)))[:, None, :, :]


if __name__ == "__main__":
    key = jax.random.PRNGKey(0)
    kx, kp = jax.random.split(key)
    N, C, H, W = 2, 32, 16, 16                    # NCHW, as in the PyTorch module
    x = jax.random.normal(kx, (N, C, H, W), jnp.float32)
    params = init_params(kp, C, H, W, reduction=16)

    out = cbam_forward(x, params)
    out = jax.block_until_ready(out)
    assert out.shape == (N, C, H, W)
    assert bool(jnp.all(jnp.isfinite(out)))

    # correctness check against a float64 NumPy reference (loose tolerance to
    # allow for the TPU's reduced-precision f32 matmul path).
    ref = cbam_reference_np(x, params)
    err = float(np.max(np.abs(np.asarray(out).astype(np.float64) - ref)))
    assert err < 2e-2, f"max abs error vs reference: {err}"
    print("KERNEL_OK")
</pallas_src>

<mosaic_0001>
module attributes {stable_mosaic.version = 11 : i64} {
  func.func @_cbam_kernel(%arg0: i32, %arg1: memref<1x32x256xf32, #tpu.memory_space<vmem>>, %arg2: memref<2x32xf32, #tpu.memory_space<vmem>>, %arg3: memref<2x1xf32, #tpu.memory_space<vmem>>, %arg4: memref<32x2xf32, #tpu.memory_space<vmem>>, %arg5: memref<32x1xf32, #tpu.memory_space<vmem>>, %arg6: memref<2x256x256xf32, #tpu.memory_space<vmem>>, %arg7: memref<2xf32, #tpu.memory_space<smem>>, %arg8: memref<1x32x256xf32, #tpu.memory_space<vmem>>) attributes {dimension_semantics = [#tpu.dimension_semantics<parallel>], iteration_bounds = array<i64: 2>, scalar_prefetch = 0 : i64, scratch_operands = 0 : i64, tpu.core_type = #tpu.core_type<tc>, window_params = [{transform_indices = @transform_0, window_bounds = array<i64: 1, 32, 256>}, {pipeline_mode = #tpu.pipeline_mode<synchronous>, transform_indices = @transform_1, window_bounds = array<i64: 2, 32>}, {pipeline_mode = #tpu.pipeline_mode<synchronous>, transform_indices = @transform_2, window_bounds = array<i64: 2, 1>}, {pipeline_mode = #tpu.pipeline_mode<synchronous>, transform_indices = @transform_3, window_bounds = array<i64: 32, 2>}, {pipeline_mode = #tpu.pipeline_mode<synchronous>, transform_indices = @transform_4, window_bounds = array<i64: 32, 1>}, {pipeline_mode = #tpu.pipeline_mode<synchronous>, transform_indices = @transform_5, window_bounds = array<i64: 2, 256, 256>}, {transform_indices = @transform_6, window_bounds = array<i64: 2>}, {transform_indices = @transform_7, window_bounds = array<i64: 1, 32, 256>}]} {
    %c0 = arith.constant 0 : index
    %c0_0 = arith.constant 0 : index
    %c0_1 = arith.constant 0 : index
    %0 = vector.load %arg1[%c0, %c0_0, %c0_1] : memref<1x32x256xf32, #tpu.memory_space<vmem>>, vector<1x32x256xf32>
    %1 = vector.shape_cast %0 : vector<1x32x256xf32> to vector<32x256xf32>
    %cst = arith.constant dense<0.000000e+00> : vector<32xf32>
    %2 = vector.multi_reduction <add>, %1, %cst [1] : vector<32x256xf32> to vector<32xf32>
    %3 = vector.shape_cast %2 : vector<32xf32> to vector<32x1xf32>
    %cst_2 = arith.constant 2.560000e+02 : f32
    %4 = vector.broadcast %cst_2 : f32 to vector<32x1xf32>
    %5 = arith.divf %3, %4 : vector<32x1xf32>
    %cst_3 = arith.constant dense<0xFF800000> : vector<32xf32>
    %6 = vector.multi_reduction <maximumf>, %1, %cst_3 [1] : vector<32x256xf32> to vector<32xf32>
    %7 = vector.shape_cast %6 : vector<32xf32> to vector<32x1xf32>
    %c0_4 = arith.constant 0 : index
    %c0_5 = arith.constant 0 : index
    %8 = vector.load %arg2[%c0_4, %c0_5] : memref<2x32xf32, #tpu.memory_space<vmem>>, vector<2x32xf32>
    %cst_6 = arith.constant dense<0.000000e+00> : vector<2x1xf32>
    %9 = tpu.matmul %8, %5, %cst_6 {dimension_numbers = #tpu.dot_dimension_numbers<[1], [0], [0], [1], [0, 0, 1, 1], [], []>} : vector<2x32xf32>, vector<32x1xf32>, vector<2x1xf32> -> vector<2x1xf32>
    %c0_7 = arith.constant 0 : index
    %c0_8 = arith.constant 0 : index
    %10 = vector.load %arg3[%c0_7, %c0_8] : memref<2x1xf32, #tpu.memory_space<vmem>>, vector<2x1xf32>
    %11 = arith.addf %9, %10 : vector<2x1xf32>
    %cst_9 = arith.constant 0.000000e+00 : f32
    %12 = vector.broadcast %cst_9 : f32 to vector<2x1xf32>
    %13 = arith.maximumf %11, %12 : vector<2x1xf32>
    %cst_10 = arith.constant dense<0.000000e+00> : vector<2x1xf32>
    %14 = tpu.matmul %8, %7, %cst_10 {dimension_numbers = #tpu.dot_dimension_numbers<[1], [0], [0], [1], [0, 0, 1, 1], [], []>} : vector<2x32xf32>, vector<32x1xf32>, vector<2x1xf32> -> vector<2x1xf32>
    %c0_11 = arith.constant 0 : index
    %c0_12 = arith.constant 0 : index
    %15 = vector.load %arg3[%c0_11, %c0_12] : memref<2x1xf32, #tpu.memory_space<vmem>>, vector<2x1xf32>
    %16 = arith.addf %14, %15 : vector<2x1xf32>
    %cst_13 = arith.constant 0.000000e+00 : f32
    %17 = vector.broadcast %cst_13 : f32 to vector<2x1xf32>
    %18 = arith.maximumf %16, %17 : vector<2x1xf32>
    %19 = arith.addf %13, %18 : vector<2x1xf32>
    %c0_14 = arith.constant 0 : index
    %c0_15 = arith.constant 0 : index
    %20 = vector.load %arg4[%c0_14, %c0_15] : memref<32x2xf32, #tpu.memory_space<vmem>>, vector<32x2xf32>
    %cst_16 = arith.constant dense<0.000000e+00> : vector<32x1xf32>
    %21 = tpu.matmul %20, %19, %cst_16 {dimension_numbers = #tpu.dot_dimension_numbers<[1], [0], [0], [1], [0, 0, 1, 1], [], []>} : vector<32x2xf32>, vector<2x1xf32>, vector<32x1xf32> -> vector<32x1xf32>
    %c0_17 = arith.constant 0 : index
    %c0_18 = arith.constant 0 : index
    %22 = vector.load %arg5[%c0_17, %c0_18] : memref<32x1xf32, #tpu.memory_space<vmem>>, vector<32x1xf32>
    %cst_19 = arith.constant 2.000000e+00 : f32
    %23 = vector.broadcast %cst_19 : f32 to vector<32x1xf32>
    %24 = arith.mulf %23, %22 : vector<32x1xf32>
    %25 = arith.addf %21, %24 : vector<32x1xf32>
    %26 = arith.negf %25 : vector<32x1xf32>
    %27 = math.exp %26 : vector<32x1xf32>
    %cst_20 = arith.constant 1.000000e+00 : f32
    %28 = vector.broadcast %cst_20 : f32 to vector<32x1xf32>
    %29 = arith.addf %28, %27 : vector<32x1xf32>
    %30 = arith.divf %28, %29 : vector<32x1xf32>
    %31 = vector.broadcast %30 : vector<32x1xf32> to vector<32x256xf32>
    %32 = arith.mulf %1, %31 : vector<32x256xf32>
    %cst_21 = arith.constant dense<0xFF800000> : vector<256xf32>
    %33 = vector.multi_reduction <maximumf>, %32, %cst_21 [0] : vector<32x256xf32> to vector<256xf32>
    %34 = vector.shape_cast %33 : vector<256xf32> to vector<1x256xf32>
    %cst_22 = arith.constant dense<0.000000e+00> : vector<256xf32>
    %35 = vector.multi_reduction <add>, %32, %cst_22 [0] : vector<32x256xf32> to vector<256xf32>
    %36 = vector.shape_cast %35 : vector<256xf32> to vector<1x256xf32>
    %cst_23 = arith.constant 3.200000e+01 : f32
    %37 = vector.broadcast %cst_23 : f32 to vector<1x256xf32>
    %38 = arith.divf %36, %37 : vector<1x256xf32>
    %c0_24 = arith.constant 0 : index
    %c0_25 = arith.constant 0 : index
    %c0_26 = arith.constant 0 : index
    %39 = vector.load %arg6[%c0_24, %c0_25, %c0_26] : memref<2x256x256xf32, #tpu.memory_space<vmem>>, vector<1x256x256xf32>
    %40 = vector.shape_cast %39 : vector<1x256x256xf32> to vector<256x256xf32>
    %cst_27 = arith.constant dense<0.000000e+00> : vector<1x256xf32>
    %41 = tpu.matmul %34, %40, %cst_27 {dimension_numbers = #tpu.dot_dimension_numbers<[1], [0], [0], [1], [0, 0, 1, 1], [], []>} : vector<1x256xf32>, vector<256x256xf32>, vector<1x256xf32> -> vector<1x256xf32>
    %c1 = arith.constant 1 : index
    %c0_28 = arith.constant 0 : index
    %c0_29 = arith.constant 0 : index
    %42 = vector.load %arg6[%c1, %c0_28, %c0_29] : memref<2x256x256xf32, #tpu.memory_space<vmem>>, vector<1x256x256xf32>
    %43 = vector.shape_cast %42 : vector<1x256x256xf32> to vector<256x256xf32>
    %cst_30 = arith.constant dense<0.000000e+00> : vector<1x256xf32>
    %44 = tpu.matmul %38, %43, %cst_30 {dimension_numbers = #tpu.dot_dimension_numbers<[1], [0], [0], [1], [0, 0, 1, 1], [], []>} : vector<1x256xf32>, vector<256x256xf32>, vector<1x256xf32> -> vector<1x256xf32>
    %45 = arith.addf %41, %44 : vector<1x256xf32>
    %c0_31 = arith.constant 0 : index
    %46 = memref.load %arg7[%c0_31] : memref<2xf32, #tpu.memory_space<smem>>
    %47 = vector.broadcast %46 : f32 to vector<1x256xf32>
    %48 = arith.mulf %45, %47 : vector<1x256xf32>
    %c1_32 = arith.constant 1 : index
    %49 = memref.load %arg7[%c1_32] : memref<2xf32, #tpu.memory_space<smem>>
    %50 = vector.broadcast %49 : f32 to vector<1x256xf32>
    %51 = arith.addf %48, %50 : vector<1x256xf32>
    %52 = arith.negf %51 : vector<1x256xf32>
    %53 = math.exp %52 : vector<1x256xf32>
    %cst_33 = arith.constant 1.000000e+00 : f32
    %54 = vector.broadcast %cst_33 : f32 to vector<1x256xf32>
    %55 = arith.addf %54, %53 : vector<1x256xf32>
    %56 = arith.divf %54, %55 : vector<1x256xf32>
    %57 = vector.broadcast %56 : vector<1x256xf32> to vector<32x256xf32>
    %58 = arith.mulf %32, %57 : vector<32x256xf32>
    %c0_34 = arith.constant 0 : index
    %c0_35 = arith.constant 0 : index
    %c0_36 = arith.constant 0 : index
    %59 = vector.load %arg8[%c0_34, %c0_35, %c0_36] : memref<1x32x256xf32, #tpu.memory_space<vmem>>, vector<1x32x256xf32>
    %60 = vector.shape_cast %59 : vector<1x32x256xf32> to vector<32x256xf32>
    %61 = vector.shape_cast %58 : vector<32x256xf32> to vector<1x32x256xf32>
    tpu.vector_store %arg8[%c0_34, %c0_35, %c0_36], %61 {strides = array<i32>} : memref<1x32x256xf32, #tpu.memory_space<vmem>>, vector<1x32x256xf32>,
    return
  }
  func.func @transform_0(%arg0: i32) -> (i32, i32, i32) {
    %c0_i32 = arith.constant 0 : i32
    %c0_i32_0 = arith.constant 0 : i32
    %c0_i32_1 = arith.constant 0 : i32
    return %arg0, %c0_i32, %c0_i32_0 : i32, i32, i32
  }
  func.func @transform_1(%arg0: i32) -> (i32, i32) {
    %c0_i32 = arith.constant 0 : i32
    %c0_i32_0 = arith.constant 0 : i32
    %c0_i32_1 = arith.constant 0 : i32
    return %c0_i32, %c0_i32_0 : i32, i32
  }
  func.func @transform_2(%arg0: i32) -> (i32, i32) {
    %c0_i32 = arith.constant 0 : i32
    %c0_i32_0 = arith.constant 0 : i32
    %c0_i32_1 = arith.constant 0 : i32
    return %c0_i32, %c0_i32_0 : i32, i32
  }
  func.func @transform_3(%arg0: i32) -> (i32, i32) {
    %c0_i32 = arith.constant 0 : i32
    %c0_i32_0 = arith.constant 0 : i32
    %c0_i32_1 = arith.constant 0 : i32
    return %c0_i32, %c0_i32_0 : i32, i32
  }
  func.func @transform_4(%arg0: i32) -> (i32, i32) {
    %c0_i32 = arith.constant 0 : i32
    %c0_i32_0 = arith.constant 0 : i32
    %c0_i32_1 = arith.constant 0 : i32
    return %c0_i32, %c0_i32_0 : i32, i32
  }
  func.func @transform_5(%arg0: i32) -> (i32, i32, i32) {
    %c0_i32 = arith.constant 0 : i32
    %c0_i32_0 = arith.constant 0 : i32
    %c0_i32_1 = arith.constant 0 : i32
    %c0_i32_2 = arith.constant 0 : i32
    return %c0_i32, %c0_i32_0, %c0_i32_1 : i32, i32, i32
  }
  func.func @transform_6(%arg0: i32) -> i32 {
    %c0_i32 = arith.constant 0 : i32
    %c0_i32_0 = arith.constant 0 : i32
    return %c0_i32 : i32
  }
  func.func @transform_7(%arg0: i32) -> (i32, i32, i32) {
    %c0_i32 = arith.constant 0 : i32
    %c0_i32_0 = arith.constant 0 : i32
    %c0_i32_1 = arith.constant 0 : i32
    return %arg0, %c0_i32, %c0_i32_0 : i32, i32, i32
  }
}

</mosaic_0001>

<bundles_post_ra>
// kernel: cbam_forward.1
= control target key start
LH: loop header
LB: loop body
LE: loop exit
PB: predicated region body
PF: predicated region fallthrough
CT: control target
= control target key end

     0   :  { %12 = vsyncpa [#allocation3], 0  ;;  %s1516_s0 = inlined_call_operand.vmem [shape: f32[2,32,256], index: 0, kind: input, shape index: {}]   ;;  %s1517_s1 = inlined_call_operand.vmem [shape: f32[2,32], index: 1, kind: input, shape index: {}]   ;;  %s1518_s2 = inlined_call_operand.vmem [shape: f32[2,1], index: 2, kind: input, shape index: {}]   ;;  %s1519_s3 = inlined_call_operand.vmem [shape: f32[32,2], index: 3, kind: input, shape index: {}]   ;;  %s1520_s4 = inlined_call_operand.vmem [shape: f32[32,1], index: 4, kind: input, shape index: {}]   ;;  %s1521_s5 = inlined_call_operand.hbm [shape: f32[2,256,256], index: 5, kind: input, shape index: {}]   ;;  %s1522_s6 = inlined_call_operand.vmem [shape: f32[2], index: 6, kind: input, shape index: {}]   ;;  %s1523_s7 = inlined_call_operand.vmem [shape: f32[2,32,256], index: 7, kind: output, shape index: {}]  }
   0x1   :  { %13 = vsyncpa [#allocation4], 0  ;;  %s1333_s24 = smov 0  }
   0x2 LB: > { %s1339_s25 = sadd.s32 4294967295, %s1284_s24   ;;  %p1095_p0 = scmp.ge.s32.totalorder %s1284_s24, 1  ;;  %s1284_s24 = sphi %s1333_s24, %s19_s24  }
   0x3   : > { %p202_p1 = scmp.lt.s32.totalorder %s1284_s24, 3  ;;  %s1286_s26 = smov [#allocation2]  }
   0x4   : > { %s226_s27 = sshll.u32 %s1286_s26, 4  ;;  %p1184_p3 = scmp.eq.s32.totalorder %s1339_s25, 0  ;;  %s227_s27 = int_to_ptr.vmem [resolvable:$true] %s226_s27 }
   0x5   : > { %p1343_p2 = pnand %p1095_p0, %p202_p1  ;;  %s240_s8 = sshll.u32 %s1522_s6, 4  ;;  %s241_s8 = int_to_ptr.vmem [resolvable:$true] %s240_s8 }
   0x6   : > { %s1240_s10 = scalar_lea.vmem %s227_s27, 16384  ;;  %p1248_p10 = scmp.lt.s32.totalorder %s227_s27, %s227_s27 }
   0x7   : > { %p1177_p4 = pneg %p1343_p2  ;;  %p1241_p7 = scmp.ne.s32.totalorder %s227_s27, %s1240_s10 }
   0x8   : > { %p1249_p11 = scmp.lt.s32.totalorder %s1240_s10, %s1240_s10 }
   0x9   : > { %p1355_p5 = pnand %p1184_p3, %p1177_p4 }
   0xa   : > { %p1250_p12 = por %p1249_p11, %p1248_p10 }
   0xb   : > { %p1231_p6 = pneg %p1355_p5 }
   0xd   : > { %p1243_p8 = pnand %p1241_p7, %p1231_p6 }
   0xf   : > { %p1244_p9 = pneg %p1243_p8 }
  0x11   : > { %p1251_p13 = pnand %p1250_p12, %p1244_p9 }
  0x13   : > { %1254 = shalt.err (!%p1251_p13)
}
  0x14   : > { %s1287_s11 = smov 256   ;;  %s1288_s12 = smov 16  }
  0x15   : > { %1180 = dma.hbm_to_vmem [thread:$0]  (!%p1355_p5), %s1521_s5, 16384, %s227_s27, [#allocation3], %s1287_s11, %s1287_s11, %s1288_s12  }
  0x16   : > { %s1255_s15 = scalar_lea.vmem %s241_s8, 16  ;;  %p1263_p7 = scmp.lt.s32.totalorder %s241_s8, %s241_s8 }
  0x17   : > { %p1256_p0 = scmp.ne.s32.totalorder %s241_s8, %s1255_s15  ;;  %p1264_p8 = scmp.lt.s32.totalorder %s1255_s15, %s1255_s15 }
  0x19   : > { %p1258_p1 = pnand %p1256_p0, %p1231_p6  ;;  %p1265_p10 = por %p1264_p8, %p1263_p7 }
  0x1b   : > { %p1259_p4 = pneg %p1258_p1 }
  0x1d   : > { %p1266_p9 = pnand %p1265_p10, %p1259_p4 }
  0x1f   : > { %1269 = shalt.err (!%p1266_p9)
}
  0x20   : > { %s1289_s16 = smov [#allocation5]   ;;  %261 = sbr.rel (%p1343_p2) target bundleno = 1024 (0x400), region = 48 }
  0x21   : > { %1183 = dma.vmem_to_smem (!%p1355_p5), %s241_s8, 16, %s1289_s16, [#allocation4]  }
  0x25   : > { %1275 = dma.done.wait (%p1184_p3), [#allocation3], 16384  }
  0x26   : > { %1277 = vsyncadd (%p1184_p3), [#allocation3], 4294950912 }
  0x27   : > { %1279 = dma.done.wait (%p1184_p3), [#allocation4], 16  }
  0x28   : > { %1281 = vsyncadd (%p1184_p3), [#allocation4], 4294967280 }
  0x29   : > { %271 = sfence }
  0x2a   : > { %p298_p6 = scmp.lt.s32.totalorder %s1339_s25, 1  ;;  %v1290_v16 = vmov 0.0   ;;  %vm1291_vm0 = vmmov 0   ;;  %v345_v27 = vld [vmem:[%s1517_s1] sm:$0x3]  ;;  %vm347_vm1 = vcmask 261120  }
  0x2b   : > { %1139 = vmatprep.subr.mxu0 %v1290_v16  ;;  %1150 = vmatprep.subr.mxu1 %v1290_v16  ;;  %v494_v30 = vld [vmem:[%s1519_s3] sm:$0xff]  ;;  %vm506_vm2 = vcmask 15360   ;;  %vm519_vm3 = vcmask 1041408   ;;  %v495_v41 = vld [vmem:[%s1519_s3 + $0x8] sm:$0xff]  ;;  %v496_v42 = vld [vmem:[%s1519_s3 + $0x10] sm:$0xff]  ;;  %v1292_v44 = vmov 0  }
  0x2c   : > { %s1527_s25 = smov (!%p298_p6, %s1339_s25), 1  ;;  %1147 = vmatprep.mubr.msk.f32.mxu0 %vm1291_vm0, %v1290_v16  ;;  %1158 = vmatprep.mubr.msk.f32.mxu1 %vm1291_vm0, %v1290_v16  ;;  %v346_v31 = vld [vmem:[%s1518_s2] sm:$0x3]  ;;  %v497_v43 = vld [vmem:[%s1519_s3 + $0x18] sm:$0xff]  ;;  %v794_v47 = vld [vmem:[#allocation2 + $0x2f0] sm:$0xff]  ;;  %s970_s21 = sld [smem:[#allocation5]] }
  0x2d   : > { %s1122_s17 = sshll.u32 %s1527_s25, 6  ;;  %1204 = vset.pattern.permute.xlu1 %v1292_v44  ;;  %1203 = vset.pattern.permute.xlu0 %v1292_v44  ;;  %v795_v45 = vld [vmem:[#allocation2 + $0x2f8] sm:$0xff]  ;;  %v729_v48 = vld [vmem:[#allocation2 + $0xf0] sm:$0xff]  ;;  %v793_v49 = vld [vmem:[#allocation2 + $0x2e8] sm:$0xff]  ;;  %s1117_s22 = sld [smem:[#allocation5 + $0x1]] }
  0x2e   : > { %s302_s20 = scalar_lea.vmem %s1516_s0, %s1122_s17  ;;  %v730_v46 = vld [vmem:[#allocation2 + $0xf8] sm:$0xff]  ;;  %v728_v50 = vld [vmem:[#allocation2 + $0xe8] sm:$0xff]  ;;  %v792_v51 = vld [vmem:[#allocation2 + $0x2e0] sm:$0xff]  ;;  %s307_s27 = scalar_lea.vmem %s1523_s7, %s1122_s17 }
  0x2f   : > { %v1394_v0 = vld [vmem:[%s302_s20 + $0x30] sm:$0xff]  ;;  %v1396_v1 = vld [vmem:[%s302_s20 + $0x38] sm:$0xff]  ;;  %v1398_v2 = vld [vmem:[%s302_s20 + $0x20] sm:$0xff] }
  0x30   : > { %v325_v3 = vadd.f32 %v1396_v1, %v1394_v0  ;;  %v342_v4 = vmax.f32 %v1394_v0, %v1396_v1  ;;  %v1404_v5 = vld [vmem:[%s302_s20 + $0x28] sm:$0xff]  ;;  %v1406_v6 = vld [vmem:[%s302_s20 + $0x10] sm:$0xff]  ;;  %v1408_v7 = vld [vmem:[%s302_s20 + $0x18] sm:$0xff] }
  0x31   : > { %v322_v8 = vadd.f32 %v1404_v5, %v1398_v2  ;;  %v319_v9 = vadd.f32 %v1408_v7, %v1406_v6  ;;  %v1414_v10 = vld [vmem:[%s302_s20] sm:$0xff]  ;;  %v1416_v11 = vld [vmem:[%s302_s20 + $0x8] sm:$0xff]  ;;  %v339_v12 = vmax.f32 %v1398_v2, %v1404_v5  ;;  %v336_v14 = vmax.f32 %v1406_v6, %v1408_v7  ;;  %v791_v53 = vld [vmem:[#allocation2 + $0x2d8] sm:$0xff] }
  0x32   : > { %326 = vadd.xlane.f32.xlu0 %v325_v3  ;;  %343 = vmax.xlane.f32.xlu1 %v342_v4  ;;  %v316_v13 = vadd.f32 %v1416_v11, %v1414_v10  ;;  %v333_v15 = vmax.f32 %v1414_v10, %v1416_v11  ;;  %v727_v52 = vld [vmem:[#allocation2 + $0xe0] sm:$0xff]  ;;  %v726_v54 = vld [vmem:[#allocation2 + $0xd8] sm:$0xff]  ;;  %v790_v55 = vld [vmem:[#allocation2 + $0x2d0] sm:$0xff] }
  0x33   : > { %v725_v56 = vld [vmem:[#allocation2 + $0xd0] sm:$0xff]  ;;  %v789_v57 = vld [vmem:[#allocation2 + $0x2c8] sm:$0xff]  ;;  %v788_v59 = vld [vmem:[#allocation2 + $0x2c0] sm:$0xff] }
  0x34   : > { %v724_v58 = vld [vmem:[#allocation2 + $0xc8] sm:$0xff]  ;;  %v723_v60 = vld [vmem:[#allocation2 + $0xc0] sm:$0xff]  ;;  %v787_v61 = vld [vmem:[#allocation2 + $0x2b8] sm:$0xff] }
  0x35   : > { %v722_v62 = vld [vmem:[#allocation2 + $0xb8] sm:$0xff]  ;;  %v786_v63 = vld [vmem:[#allocation2 + $0x2b0] sm:$0xff]  ;;  %v785_v4 = vld [vmem:[#allocation2 + $0x2a8] sm:$0xff] }
  0x36   : > { %323 = vadd.xlane.f32.xlu0 %v322_v8  ;;  %320 = vadd.xlane.f32.xlu1 %v319_v9  ;;  %v721_v3 = vld [vmem:[#allocation2 + $0xb0] sm:$0xff]  ;;  %v720_v8 = vld [vmem:[#allocation2 + $0xa8] sm:$0xff]  ;;  %v784_v9 = vld [vmem:[#allocation2 + $0x2a0] sm:$0xff] }
  0x37   : > { %v703_v44 = vld [vmem:[#allocation2 + $0x20] sm:$0xff] }
  0x3a   : > { %340 = vmax.xlane.f32.xlu0 %v339_v12  ;;  %317 = vadd.xlane.f32.xlu1 %v316_v13  ;;  %v719_v12 = vld [vmem:[#allocation2 + $0xa0] sm:$0xff]  ;;  %v783_v13 = vld [vmem:[#allocation2 + $0x298] sm:$0xff] }
  0x3e   : > { %337 = vmax.xlane.f32.xlu0 %v336_v14  ;;  %334 = vmax.xlane.f32.xlu1 %v333_v15  ;;  %v718_v14 = vld [vmem:[#allocation2 + $0x98] sm:$0xff]  ;;  %v782_v15 = vld [vmem:[#allocation2 + $0x290] sm:$0xff] }
  0xbb   : > { %v327_v17 = vpop.xlane.xlu0 %326  ;;  %v344_v18 = vpop.xlane.xlu1 %343 }
  0xbc   : > { %v332_v19 = vmul.f32 0.00390625, %v327_v17  ;;  %1151 = vmatpush3.msra.mxu1 %v344_v18  ;;  %v781_v17 = vld [vmem:[#allocation2 + $0x288] sm:$0xff] }
  0xbd   : > { %1152 = vmatprep.subr.mxu1 %v1290_v16  ;;  %v716_v18 = vld [vmem:[#allocation2 + $0x88] sm:$0xff] }
  0xbe   : > { %1140 = vmatpush3.msra.mxu0 %v332_v19  ;;  %v780_v19 = vld [vmem:[#allocation2 + $0x280] sm:$0xff] }
  0xbf   : > { %v324_v20 = vpop.xlane.xlu0 %323  ;;  %1141 = vmatprep.subr.mxu0 %v1290_v16  ;;  %v321_v21 = vpop.xlane.xlu1 %320 }
  0xc0   : > { %v331_v22 = vmul.f32 0.00390625, %v324_v20  ;;  %v330_v23 = vmul.f32 0.00390625, %v321_v21  ;;  %v715_v20 = vld [vmem:[#allocation2 + $0x80] sm:$0xff]  ;;  %v779_v21 = vld [vmem:[#allocation2 + $0x278] sm:$0xff] }
  0xc2   : > { %1142 = vmatpush3.msra.mxu0 %v331_v22  ;;  %v714_v22 = vld [vmem:[#allocation2 + $0x78] sm:$0xff] }
  0xc3   : > { %1143 = vmatprep.subr.mxu0 %v1290_v16  ;;  %v341_v24 = vpop.xlane.xlu0 %340  ;;  %v318_v25 = vpop.xlane.xlu1 %317 }
  0xc4   : > { %1144 = vmatpush3.msra.mxu0 %v330_v23  ;;  %1153 = vmatpush3.msra.mxu1 %v341_v24  ;;  %v329_v26 = vmul.f32 0.00390625, %v318_v25  ;;  %v778_v23 = vld [vmem:[#allocation2 + $0x270] sm:$0xff]  ;;  %v777_v25 = vld [vmem:[#allocation2 + $0x268] sm:$0xff] }
  0xc5   : > { %1154 = vmatprep.subr.mxu1 %v1290_v16  ;;  %1145 = vmatprep.subr.mxu0 %v1290_v16  ;;  %v713_v24 = vld [vmem:[#allocation2 + $0x70] sm:$0xff] }
  0xc6   : > { %1146 = vmatpush3.msra.mxu0 %v329_v26  ;;  %v712_v26 = vld [vmem:[#allocation2 + $0x68] sm:$0xff] }
  0xc7   : > { %v338_v28 = vpop.xlane.xlu0 %337  ;;  %1148 = vmatmul.mubr.msk.f32.vlgmr.msra.gmra.mxu0 %vm347_vm1, %v345_v27  ;;  %v335_v29 = vpop.xlane.xlu1 %334 }
  0xc8   : > { %1155 = vmatpush3.msra.mxu1 %v338_v28  ;;  %1163 = vmatprep.mubr.msk.f32.mxu0 %vm506_vm2, %v494_v30  ;;  %v711_v28 = vld [vmem:[#allocation2 + $0x60] sm:$0xff]  ;;  %v710_v30 = vld [vmem:[#allocation2 + $0x58] sm:$0xff] }
  0xc9   : > { %1156 = vmatprep.subr.mxu1 %v1290_v16  ;;  %v717_v16 = vld [vmem:[#allocation2 + $0x90] sm:$0xff] }
  0xca   : > { %1157 = vmatpush3.msra.mxu1 %v335_v29  ;;  %v775_v29 = vld [vmem:[#allocation2 + $0x258] sm:$0xff] }
  0xcb   : > { %1159 = vmatmul.mubr.msk.f32.vlgmr.msra.gmra.mxu1 %vm347_vm1, %v345_v27  ;;  %828 = vmatprep.subr.mxu1 %v795_v45  ;;  %v776_v27 = vld [vmem:[#allocation2 + $0x260] sm:$0xff]  ;;  %v767_v45 = vld [vmem:[#allocation2 + $0x218] sm:$0xff] }
  0xcc   : > { %829 = vmatpush1.msra.mxu1 %v794_v47  ;;  %v766_v47 = vld [vmem:[#allocation2 + $0x210] sm:$0xff] }
  0xcd   : > { %830 = vmatprep.subr.mxu1 %v793_v49  ;;  %v765_v49 = vld [vmem:[#allocation2 + $0x208] sm:$0xff] }
  0xce   : > { %831 = vmatpush1.msra.mxu1 %v792_v51  ;;  %v764_v51 = vld [vmem:[#allocation2 + $0x200] sm:$0xff] }
  0xcf   : > { %832 = vmatprep.subr.mxu1 %v791_v53  ;;  %v827_v53 = vld [vmem:[#allocation2 + $0x3f8] sm:$0xff] }
  0xd0   : > { %833 = vmatpush1.msra.mxu1 %v790_v55  ;;  %v826_v55 = vld [vmem:[#allocation2 + $0x3f0] sm:$0xff] }
  0xd1   : > { %834 = vmatprep.subr.mxu1 %v789_v57  ;;  %v825_v57 = vld [vmem:[#allocation2 + $0x3e8] sm:$0xff] }
  0xd2   : > { %835 = vmatpush1.msra.mxu1 %v788_v59  ;;  %v824_v59 = vld [vmem:[#allocation2 + $0x3e0] sm:$0xff] }
  0xd3   : > { %836 = vmatprep.subr.mxu1 %v787_v61  ;;  %v823_v61 = vld [vmem:[#allocation2 + $0x3d8] sm:$0xff] }
  0xd4   : > { %837 = vmatpush1.msra.mxu1 %v786_v63  ;;  %v499_v63 = vld [vmem:[%s1520_s4 + $0x8] sm:$0xff] }
  0xd5   : > { %838 = vmatprep.subr.mxu1 %v785_v4  ;;  %v503_v4 = vmul.f32 2.0, %v499_v63  ;;  %v810_v63 = vld [vmem:[#allocation2 + $0x370] sm:$0xff] }
  0xd6   : > { %839 = vmatpush1.msra.mxu1 %v784_v9 }
  0xd7   : > { %840 = vmatprep.subr.mxu1 %v783_v13  ;;  %v500_v13 = vld [vmem:[%s1520_s4 + $0x10] sm:$0xff] }
  0xd8   : > { %841 = vmatpush1.msra.mxu1 %v782_v15 }
  0xd9   : > { %842 = vmatprep.subr.mxu1 %v781_v17 }
  0xda   : > { %843 = vmatpush1.msra.mxu1 %v780_v19  ;;  %v504_v19 = vmul.f32 2.0, %v500_v13  ;;  %v807_v13 = vld [vmem:[#allocation2 + $0x358] sm:$0xff] }
  0xdb   : > { %844 = vmatprep.subr.mxu1 %v779_v21 }
  0xdc   : > { %845 = vmatpush1.msra.mxu1 %v778_v23 }
  0xdd   : > { %846 = vmatprep.subr.mxu1 %v777_v25 }
  0xde   : > { %847 = vmatpush1.msra.mxu1 %v776_v27 }
  0xdf   : > { %848 = vmatprep.subr.mxu1 %v775_v29 }
 0x187   : > { %v417_v32 = vpop.f32.mrf.mxu0 }
 0x188   : > { %v418_v33 = vadd.f32 %v417_v32, %v346_v31  ;;  %v709_v32 = vld [vmem:[#allocation2 + $0x50] sm:$0xff] }
 0x189   : > { %v1149_v34 = vpop.f32.mrf.mxu0 }
 0x18a   : > { %v421_v36 = vmax.f32 %v418_v33, 0.0  ;;  %v773_v33 = vld [vmem:[#allocation2 + $0x248] sm:$0xff] }
 0x18b   : > { %v488_v35 = vpop.f32.mrf.mxu1  ;;  %v708_v34 = vld [vmem:[#allocation2 + $0x48] sm:$0xff] }
 0x18c   : > { %v489_v37 = vadd.f32 %v488_v35, %v346_v31  ;;  %v774_v31 = vld [vmem:[#allocation2 + $0x250] sm:$0xff]  ;;  %v772_v35 = vld [vmem:[#allocation2 + $0x240] sm:$0xff] }
 0x18d   : > { %v1160_v38 = vpop.f32.mrf.mxu1  ;;  %849 = vmatpush1.msra.mxu1 %v774_v31 }
 0x18e   : > { %v492_v39 = vmax.f32 %v489_v37, 0.0  ;;  %v771_v37 = vld [vmem:[#allocation2 + $0x238] sm:$0xff]  ;;  %850 = vmatprep.subr.mxu1 %v773_v33 }
 0x18f   : > { %v706_v38 = vld [vmem:[#allocation2 + $0x38] sm:$0xff]  ;;  %851 = vmatpush1.msra.mxu1 %v772_v35  ;;  %v822_v35 = vld [vmem:[#allocation2 + $0x3d0] sm:$0xff] }
 0x190   : > { %v493_v40 = vadd.f32 %v492_v39, %v421_v36  ;;  %v707_v36 = vld [vmem:[#allocation2 + $0x40] sm:$0xff]  ;;  %v770_v39 = vld [vmem:[#allocation2 + $0x230] sm:$0xff]  ;;  %852 = vmatprep.subr.mxu1 %v771_v37  ;;  %v821_v37 = vld [vmem:[#allocation2 + $0x3c8] sm:$0xff] }
 0x191   : > { %853 = vmatpush1.msra.mxu1 %v770_v39 }
 0x192   : > { %1161 = vmatprep.subr.msk.mxu0 %vm519_vm3, %v493_v40 }
 0x193   : > { %1162 = vmatpush3.msk.msra.mxu0 %vm519_vm3, %v493_v40  ;;  %v705_v40 = vld [vmem:[#allocation2 + $0x30] sm:$0xff] }
 0x194   : > { %1164 = vmatmul.mubr.msk.f32.vlgmr.msra.gmra.mxu0 %vm506_vm2, %v495_v41  ;;  %899 = vmatprep.subr.mxu0 %v730_v46  ;;  %v769_v41 = vld [vmem:[#allocation2 + $0x228] sm:$0xff]  ;;  %v702_v46 = vld [vmem:[#allocation2 + $0x18] sm:$0xff] }
 0x195   : > { %1166 = vmatprep.mubr.msk.f32.mxu0 %vm506_vm2, %v496_v42  ;;  %900 = vmatpush1.msra.mxu0 %v729_v48  ;;  %v704_v42 = vld [vmem:[#allocation2 + $0x28] sm:$0xff]  ;;  %v701_v48 = vld [vmem:[#allocation2 + $0x10] sm:$0xff] }
 0x196   : > { %901 = vmatprep.subr.mxu0 %v728_v50  ;;  %854 = vmatprep.subr.mxu1 %v769_v41  ;;  %v700_v50 = vld [vmem:[#allocation2 + $0x8] sm:$0xff]  ;;  %v755_v41 = vld [vmem:[#allocation2 + $0x1c0] sm:$0xff] }
 0x197   : > { %902 = vmatpush1.msra.mxu0 %v727_v52  ;;  %v699_v52 = vld [vmem:[#allocation2] sm:$0xff] }
 0x198   : > { %1167 = vmatmul.mubr.msk.f32.gmra.mxu0 %vm506_vm2, %v497_v43  ;;  %903 = vmatprep.subr.mxu0 %v726_v54  ;;  %v768_v43 = vld [vmem:[#allocation2 + $0x220] sm:$0xff]  ;;  %v762_v54 = vld [vmem:[#allocation2 + $0x1f8] sm:$0xff] }
 0x199   : > { %904 = vmatpush1.msra.mxu0 %v725_v56  ;;  %855 = vmatpush1.msra.mxu1 %v768_v43  ;;  %v761_v56 = vld [vmem:[#allocation2 + $0x1f0] sm:$0xff]  ;;  %v754_v43 = vld [vmem:[#allocation2 + $0x1b8] sm:$0xff] }
 0x19a   : > { %905 = vmatprep.subr.mxu0 %v724_v58  ;;  %856 = vmatprep.subr.mxu1 %v767_v45  ;;  %v760_v58 = vld [vmem:[#allocation2 + $0x1e8] sm:$0xff]  ;;  %v818_v45 = vld [vmem:[#allocation2 + $0x3b0] sm:$0xff] }
 0x19b   : > { %906 = vmatpush1.msra.mxu0 %v723_v60  ;;  %857 = vmatpush1.msra.mxu1 %v766_v47  ;;  %v759_v60 = vld [vmem:[#allocation2 + $0x1e0] sm:$0xff]  ;;  %v817_v47 = vld [vmem:[#allocation2 + $0x3a8] sm:$0xff] }
 0x19c   : > { %907 = vmatprep.subr.mxu0 %v722_v62  ;;  %858 = vmatprep.subr.mxu1 %v765_v49  ;;  %v758_v62 = vld [vmem:[#allocation2 + $0x1d8] sm:$0xff]  ;;  %v816_v49 = vld [vmem:[#allocation2 + $0x3a0] sm:$0xff] }
 0x19d   : > { %908 = vmatpush1.msra.mxu0 %v721_v3  ;;  %859 = vmatpush1.msra.mxu1 %v764_v51  ;;  %v498_v3 = vld [vmem:[%s1520_s4] sm:$0xff]  ;;  %v815_v51 = vld [vmem:[#allocation2 + $0x398] sm:$0xff] }
 0x19e   : > { %909 = vmatprep.subr.mxu0 %v720_v8  ;;  %860 = vmatprep.subr.mxu1 %v827_v53  ;;  %v501_v8 = vld [vmem:[%s1520_s4 + $0x18] sm:$0xff]  ;;  %v502_v9 = vmul.f32 2.0, %v498_v3  ;;  %v745_v3 = vld [vmem:[#allocation2 + $0x170] sm:$0xff] }
 0x19f   : > { %910 = vmatpush1.msra.mxu0 %v719_v12  ;;  %861 = vmatpush2.msra.mxu1 %v826_v55  ;;  %v505_v15 = vmul.f32 2.0, %v501_v8  ;;  %v749_v55 = vld [vmem:[#allocation2 + $0x190] sm:$0xff]  ;;  %v744_v8 = vld [vmem:[#allocation2 + $0x168] sm:$0xff] }
 0x1a0   : > { %911 = vmatprep.subr.mxu0 %v718_v14  ;;  %862 = vmatprep.subr.mxu1 %v825_v57  ;;  %v748_v57 = vld [vmem:[#allocation2 + $0x188] sm:$0xff] }
 0x1a1   : > { %912 = vmatpush1.msra.mxu0 %v717_v16  ;;  %863 = vmatpush2.msra.mxu1 %v824_v59  ;;  %v747_v59 = vld [vmem:[#allocation2 + $0x180] sm:$0xff] }
 0x1a2   : > { %913 = vmatprep.subr.mxu0 %v716_v18  ;;  %864 = vmatprep.subr.mxu1 %v823_v61  ;;  %v746_v61 = vld [vmem:[#allocation2 + $0x178] sm:$0xff] }
 0x1a3   : > { %914 = vmatpush1.msra.mxu0 %v715_v20  ;;  %865 = vmatpush2.msra.mxu1 %v822_v35  ;;  %v796_v35 = vld [vmem:[#allocation2 + $0x300] sm:$0xff] }
 0x1a4   : > { %915 = vmatprep.subr.mxu0 %v714_v22  ;;  %866 = vmatprep.subr.mxu1 %v821_v37 }
 0x1a5   : > { %916 = vmatpush1.msra.mxu0 %v713_v24 }
 0x1a6   : > { %917 = vmatprep.subr.mxu0 %v712_v26 }
 0x1a7   : > { %918 = vmatpush1.msra.mxu0 %v711_v28 }
 0x1a8   : > { %919 = vmatprep.subr.mxu0 %v710_v30 }
 0x1a9   : > { %920 = vmatpush1.msra.mxu0 %v709_v32 }
 0x1aa   : > { %921 = vmatprep.subr.mxu0 %v708_v34 }
 0x1ab   : > { %922 = vmatpush1.msra.mxu0 %v707_v36  ;;  %v757_v36 = vld [vmem:[#allocation2 + $0x1d0] sm:$0xff] }
 0x1ac   : > { %923 = vmatprep.subr.mxu0 %v706_v38  ;;  %v756_v38 = vld [vmem:[#allocation2 + $0x1c8] sm:$0xff] }
 0x1ad   : > { %924 = vmatpush1.msra.mxu0 %v705_v40  ;;  %v820_v40 = vld [vmem:[#allocation2 + $0x3c0] sm:$0xff] }
 0x1ae   : > { %925 = vmatprep.subr.mxu0 %v704_v42  ;;  %867 = vmatpush2.msra.mxu1 %v820_v40  ;;  %v819_v42 = vld [vmem:[#allocation2 + $0x3b8] sm:$0xff] }
 0x1af   : > { %926 = vmatpush1.msra.mxu0 %v703_v44  ;;  %868 = vmatprep.subr.mxu1 %v819_v42 }
 0x1b0   : > { %927 = vmatprep.subr.mxu0 %v702_v46  ;;  %v753_v46 = vld [vmem:[#allocation2 + $0x1b0] sm:$0xff]  ;;  %869 = vmatpush2.msra.mxu1 %v818_v45 }
 0x1b1   : > { %928 = vmatpush1.msra.mxu0 %v701_v48  ;;  %v752_v48 = vld [vmem:[#allocation2 + $0x1a8] sm:$0xff]  ;;  %870 = vmatprep.subr.mxu1 %v817_v47 }
 0x1b2   : > { %929 = vmatprep.subr.mxu0 %v700_v50  ;;  %v751_v50 = vld [vmem:[#allocation2 + $0x1a0] sm:$0xff]  ;;  %871 = vmatpush2.msra.mxu1 %v816_v49 }
 0x1b3   : > { %930 = vmatpush1.msra.mxu0 %v699_v52  ;;  %v750_v52 = vld [vmem:[#allocation2 + $0x198] sm:$0xff]  ;;  %872 = vmatprep.subr.mxu1 %v815_v51 }
 0x1b4   : > { %931 = vmatprep.subr.mxu0 %v762_v54  ;;  %v814_v54 = vld [vmem:[#allocation2 + $0x390] sm:$0xff] }
 0x1b5   : > { %932 = vmatpush2.msra.mxu0 %v761_v56  ;;  %v813_v56 = vld [vmem:[#allocation2 + $0x388] sm:$0xff]  ;;  %873 = vmatpush2.msra.mxu1 %v814_v54 }
 0x1b6   : > { %933 = vmatprep.subr.mxu0 %v760_v58  ;;  %v812_v58 = vld [vmem:[#allocation2 + $0x380] sm:$0xff]  ;;  %874 = vmatprep.subr.mxu1 %v813_v56 }
 0x1b7   : > { %934 = vmatpush2.msra.mxu0 %v759_v60  ;;  %v811_v60 = vld [vmem:[#allocation2 + $0x378] sm:$0xff]  ;;  %875 = vmatpush2.msra.mxu1 %v812_v58 }
 0x1b8   : > { %935 = vmatprep.subr.mxu0 %v758_v62  ;;  %876 = vmatprep.subr.mxu1 %v811_v60 }
 0x1b9   : > { %936 = vmatpush2.msra.mxu0 %v757_v36  ;;  %877 = vmatpush2.msra.mxu1 %v810_v63  ;;  %v731_v36 = vld [vmem:[#allocation2 + $0x100] sm:$0xff] }
 0x1ba   : > { %937 = vmatprep.subr.mxu0 %v756_v38 }
 0x1bb   : > { %938 = vmatpush2.msra.mxu0 %v755_v41 }
 0x1bc   : > { %939 = vmatprep.subr.mxu0 %v754_v43 }
 0x1bd   : > { %940 = vmatpush2.msra.mxu0 %v753_v46 }
 0x1be   : > { %941 = vmatprep.subr.mxu0 %v752_v48 }
 0x1bf   : > { %942 = vmatpush2.msra.mxu0 %v751_v50 }
 0x1c0   : > { %943 = vmatprep.subr.mxu0 %v750_v52 }
 0x1c1   : > { %944 = vmatpush2.msra.mxu0 %v749_v55 }
 0x1c2   : > { %945 = vmatprep.subr.mxu0 %v748_v57 }
 0x1c3   : > { %946 = vmatpush2.msra.mxu0 %v747_v59 }
 0x1c4   : > { %947 = vmatprep.subr.mxu0 %v746_v61 }
 0x1c5   : > { %948 = vmatpush2.msra.mxu0 %v745_v3 }
 0x1c6   : > { %949 = vmatprep.subr.mxu0 %v744_v8 }
 0x254   : > { %v1165_v12 = vpop.f32.mrf.mxu0 }
 0x255   : > { %v595_v14 = vadd.f32 %v1165_v12, %v503_v4  ;;  %v809_v4 = vld [vmem:[#allocation2 + $0x368] sm:$0xff]  ;;  %v743_v12 = vld [vmem:[#allocation2 + $0x160] sm:$0xff] }
 0x256   : > { %v589_v16 = vpop.f32.mrf.mxu0  ;;  %878 = vmatprep.subr.mxu1 %v809_v4  ;;  %950 = vmatpush2.msra.mxu0 %v743_v12 }
 0x257   : > { %v1114_v17 = vmul.f32 -1.442695, %v595_v14  ;;  %v590_v18 = vadd.f32 %v589_v16, %v502_v9  ;;  %v808_v9 = vld [vmem:[#allocation2 + $0x360] sm:$0xff]  ;;  %v742_v14 = vld [vmem:[#allocation2 + $0x158] sm:$0xff]  ;;  %v741_v16 = vld [vmem:[#allocation2 + $0x150] sm:$0xff] }
 0x258   : > { %v1168_v20 = vpop.f32.mrf.mxu0  ;;  %879 = vmatpush2.msra.mxu1 %v808_v9  ;;  %951 = vmatprep.subr.mxu0 %v742_v14 }
 0x259   : > { %1205 = vpow2.f32 %v1114_v17  ;;  %v1113_v21 = vmul.f32 -1.442695, %v590_v18  ;;  %v605_v22 = vadd.f32 %v1168_v20, %v505_v15  ;;  %v806_v15 = vld [vmem:[#allocation2 + $0x350] sm:$0xff]  ;;  %v805_v17 = vld [vmem:[#allocation2 + $0x348] sm:$0xff]  ;;  %880 = vmatprep.subr.mxu1 %v807_v13  ;;  %v739_v20 = vld [vmem:[#allocation2 + $0x140] sm:$0xff]  ;;  %952 = vmatpush2.msra.mxu0 %v741_v16 }
 0x25a   : > { %v599_v23 = vpop.f32.mrf.mxu0  ;;  %v740_v18 = vld [vmem:[#allocation2 + $0x148] sm:$0xff]  ;;  %881 = vmatpush2.msra.mxu1 %v806_v15 }
 0x25b   : > { %1207 = vpow2.f32 %v1113_v21  ;;  %v1116_v24 = vmul.f32 -1.442695, %v605_v22  ;;  %v600_v25 = vadd.f32 %v599_v23, %v504_v19  ;;  %v804_v19 = vld [vmem:[#allocation2 + $0x340] sm:$0xff]  ;;  %v803_v21 = vld [vmem:[#allocation2 + $0x338] sm:$0xff]  ;;  %882 = vmatprep.subr.mxu1 %v805_v17  ;;  %953 = vmatprep.subr.mxu0 %v740_v18  ;;  %v802_v23 = vld [vmem:[#allocation2 + $0x330] sm:$0xff] }
 0x25c   : > { %v738_v22 = vld [vmem:[#allocation2 + $0x138] sm:$0xff]  ;;  %883 = vmatpush2.msra.mxu1 %v804_v19  ;;  %954 = vmatpush2.msra.mxu0 %v739_v20 }
 0x25d   : > { %v1115_v26 = vmul.f32 -1.442695, %v600_v25  ;;  %1209 = vpow2.f32 %v1116_v24  ;;  %v737_v24 = vld [vmem:[#allocation2 + $0x130] sm:$0xff]  ;;  %v801_v25 = vld [vmem:[#allocation2 + $0x328] sm:$0xff]  ;;  %884 = vmatprep.subr.mxu1 %v803_v21  ;;  %955 = vmatprep.subr.mxu0 %v738_v22 }
 0x25e   : > { %885 = vmatpush2.msra.mxu1 %v802_v23  ;;  %956 = vmatpush2.msra.mxu0 %v737_v24 }
 0x25f   : > { %1211 = vpow2.f32 %v1115_v26  ;;  %v736_v26 = vld [vmem:[#allocation2 + $0x128] sm:$0xff]  ;;  %886 = vmatprep.subr.mxu1 %v801_v25  ;;  %v971_v25 = vstv %s970_s21 }
 0x260   : > { %957 = vmatprep.subr.mxu0 %v736_v26 }
 0x266   : > { %v1206_v27 = vpop.eup %1205 }
 0x267   : > { %v621_v28 = vadd.f32 1.0, %v1206_v27  ;;  %v800_v27 = vld [vmem:[#allocation2 + $0x320] sm:$0xff] }
 0x268   : > { %v1208_v29 = vpop.eup %1207  ;;  %887 = vmatpush2.msra.mxu1 %v800_v27  ;;  %v975_v27 = vstv %s1117_s22 }
 0x269   : > { %1213 = vrcp.f32 %v621_v28  ;;  %v620_v30 = vadd.f32 1.0, %v1208_v29  ;;  %v735_v28 = vld [vmem:[#allocation2 + $0x120] sm:$0xff]  ;;  %v799_v29 = vld [vmem:[#allocation2 + $0x318] sm:$0xff] }
 0x26a   : > { %v1210_v31 = vpop.eup %1209  ;;  %958 = vmatpush2.msra.mxu0 %v735_v28  ;;  %888 = vmatprep.subr.mxu1 %v799_v29 }
 0x26b   : > { %1215 = vrcp.f32 %v620_v30  ;;  %v623_v34 = vadd.f32 1.0, %v1210_v31  ;;  %v734_v30 = vld [vmem:[#allocation2 + $0x118] sm:$0xff]  ;;  %v798_v31 = vld [vmem:[#allocation2 + $0x310] sm:$0xff] }
 0x26c   : > { %v1212_v32 = vpop.eup %1211  ;;  %959 = vmatprep.subr.mxu0 %v734_v30  ;;  %889 = vmatpush2.msra.mxu1 %v798_v31 }
 0x26d   : > { %v622_v33 = vadd.f32 1.0, %v1212_v32  ;;  %v733_v32 = vld [vmem:[#allocation2 + $0x110] sm:$0xff] }
 0x26e   : > { %960 = vmatpush2.msra.mxu0 %v733_v32 }
 0x26f   : > { %1217 = vrcp.f32 %v622_v33  ;;  %v797_v33 = vld [vmem:[#allocation2 + $0x308] sm:$0xff] }
 0x270   : > { %1219 = vrcp.f32 %v623_v34  ;;  %v732_v34 = vld [vmem:[#allocation2 + $0x108] sm:$0xff]  ;;  %890 = vmatprep.subr.mxu1 %v797_v33 }
 0x271   : > { %961 = vmatprep.subr.mxu0 %v732_v34  ;;  %891 = vmatpush2.msra.mxu1 %v796_v35 }
 0x272   : > { %962 = vmatpush2.msra.mxu0 %v731_v36 }
 0x276   : > { %v1214_v39 = vpop.eup %1213 }
 0x277   : > { %639 = vperm.xlu1 %1204, %v1214_v39  }
 0x278   : > { %v1216_v44 = vpop.eup %1215 }
 0x279   : > { %634 = vperm.xlu0 %1203, %v1216_v44  }
 0x27c   : > { %v1218_v53 = vpop.eup %1217 }
 0x27d   : > { %644 = vperm.xlu1 %1204, %v1218_v53   ;;  %v1220_v62 = vpop.eup %1219 }
 0x281   : > { %649 = vperm.xlu1 %1204, %v1220_v62  }
 0x2f2   : > { %v640_v37 = vpop.permute.xlu1 %639 }
 0x2f3   : > { %v1467_v42 = vmul.f32 %v640_v37, %v1406_v6  ;;  %v1470_v43 = vmul.f32 %v640_v37, %v1408_v7 }
 0x2f4   : > { %v635_v38 = vpop.permute.xlu0 %634 }
 0x2f5   : > { %v1461_v39 = vmul.f32 %v635_v38, %v1414_v10  ;;  %v1464_v40 = vmul.f32 %v635_v38, %v1416_v11 }
 0x2f7   : > { %v678_v10 = vadd.f32 %v1467_v42, %v1461_v39  ;;  %v687_v11 = vadd.f32 %v1470_v43, %v1464_v40 }
 0x2f8   : > { %v645_v41 = vpop.permute.xlu1 %644 }
 0x2f9   : > { %v1473_v44 = vmul.f32 %v645_v41, %v1398_v2  ;;  %v1476_v45 = vmul.f32 %v645_v41, %v1404_v5 }
 0x2fb   : > { %v679_v47 = vadd.f32 %v678_v10, %v1473_v44  ;;  %v688_v6 = vadd.f32 %v687_v11, %v1476_v45  ;;  %v660_v5 = vmax.f32 %v1461_v39, %v1473_v44  ;;  %v669_v48 = vmax.f32 %v1464_v40, %v1476_v45 }
 0x2fc   : > { %v650_v46 = vpop.permute.xlu1 %649  ;;  %v990_v11 = vlaneseq }
 0x2fd   : > { %v1485_v7 = vmul.f32 %v650_v46, %v1394_v0  ;;  %v1488_v2 = vmul.f32 %v650_v46, %v1396_v1 }
 0x2fe   : > { %v991_v46 = vshrl.u32 %v990_v11, 7 }
 0x2ff   : > { %v661_v49 = vmax.f32 %v1467_v42, %v1485_v7  ;;  %v670_v50 = vmax.f32 %v1470_v43, %v1488_v2  ;;  %v680_v51 = vadd.f32 %v679_v47, %v1485_v7  ;;  %v689_v0 = vadd.f32 %v688_v6, %v1488_v2 }
 0x300   : > { %v992_v47 = vsub.s32 0, %v991_v46 }
 0x301   : > { %v662_v52 = vmax.f32 %v660_v5, %v661_v49  ;;  %v671_v53 = vmax.f32 %v669_v48, %v670_v50  ;;  %v681_v1 = vrot.slane %v680_v51, 4  ;;  %v690_v54 = vrot.slane %v689_v0, 4 }
 0x303   : > { %v663_v55 = vrot.slane %v662_v52, 4  ;;  %v672_v56 = vrot.slane %v671_v53, 4  ;;  %v682_v57 = vadd.f32 %v681_v1, %v680_v51  ;;  %v691_v58 = vadd.f32 %v690_v54, %v689_v0 }
 0x305   : > { %v664_v59 = vmax.f32 %v662_v52, %v663_v55  ;;  %v683_v60 = vrot.slane %v682_v57, 2  ;;  %v692_v61 = vrot.slane %v691_v58, 2  ;;  %v673_v62 = vmax.f32 %v671_v53, %v672_v56 }
 0x307   : > { %v665_v63 = vrot.slane %v664_v59, 2  ;;  %v684_v3 = vadd.f32 %v683_v60, %v682_v57  ;;  %v693_v4 = vadd.f32 %v692_v61, %v691_v58  ;;  %v674_v8 = vrot.slane %v673_v62, 2 }
 0x309   : > { %v666_v9 = vmax.f32 %v664_v59, %v665_v63  ;;  %v694_v12 = vrot.slane %v693_v4, 1  ;;  %v675_v13 = vmax.f32 %v673_v62, %v674_v8  ;;  %v685_v14 = vrot.slane %v684_v3, 1 }
 0x30b   : > { %v667_v15 = vrot.slane %v666_v9, 1  ;;  %v695_v16 = vadd.f32 %v694_v12, %v693_v4  ;;  %v676_v17 = vrot.slane %v675_v13, 1  ;;  %v686_v18 = vadd.f32 %v685_v14, %v684_v3 }
 0x30d   : > { %v698_v19 = vmul.f32 0.03125, %v695_v16  ;;  %v677_v20 = vmax.f32 %v675_v13, %v676_v17  ;;  %v697_v21 = vmul.f32 0.03125, %v686_v18  ;;  %v668_v22 = vmax.f32 %v666_v9, %v667_v15 }
 0x30f   : > { %892 = vmatprep.mubr.f32.mxu1 %v698_v19  ;;  %963 = vmatprep.mubr.f32.mxu0 %v677_v20 }
 0x310   : > { %893 = vmatmul.mubr.f32.vlgmr.msra.gmra.mxu1 %v697_v21  ;;  %964 = vmatmul.mubr.f32.vlgmr.msra.gmra.mxu0 %v668_v22 }
 0x3d0   : > { %v894_v23 = vpop.f32.mrf.mxu1  ;;  %v965_v24 = vpop.f32.mrf.mxu0 }
 0x3d1   : > { %v966_v26 = vadd.f32 %v965_v24, %v894_v23 }
 0x3d2   : > { %v896_v28 = vpop.f32.mrf.mxu1  ;;  %v967_v29 = vpop.f32.mrf.mxu0 }
 0x3d3   : > { %v972_v30 = vmul.f32 %v971_v25, %v966_v26  ;;  %v968_v31 = vadd.f32 %v967_v29, %v896_v28 }
 0x3d5   : > { %v976_v32 = vadd.f32 %v975_v27, %v972_v30  ;;  %v973_v33 = vmul.f32 %v971_v25, %v968_v31 }
 0x3d7   : > { %v1118_v34 = vmul.f32 -1.442695, %v976_v32  ;;  %v977_v35 = vadd.f32 %v975_v27, %v973_v33 }
 0x3d9   : > { %1221 = vpow2.f32 %v1118_v34  ;;  %v1119_v36 = vmul.f32 -1.442695, %v977_v35 }
 0x3db   : > { %1223 = vpow2.f32 %v1119_v36 }
 0x3e6   : > { %v1222_v37 = vpop.eup %1221 }
 0x3e7   : > { %v984_v38 = vadd.f32 1.0, %v1222_v37 }
 0x3e8   : > { %v1224_v41 = vpop.eup %1223 }
 0x3e9   : > { %1225 = vrcp.f32 %v984_v38  ;;  %v985_v10 = vadd.f32 1.0, %v1224_v41 }
 0x3eb   : > { %1227 = vrcp.f32 %v985_v10 }
 0x3f6   : > { %v1226_v6 = vpop.eup %1225 }
 0x3f7   : > { %v993_v5 = vrot.slane %v1226_v6, %v992_v47 }
 0x3f8   : > { %v1228_v48 = vpop.eup %1227 }
 0x3f9   : > { %v998_v49 = vmul.f32 %v993_v5, %v1461_v39  ;;  %v1000_v50 = vmul.f32 %v993_v5, %v1467_v42  ;;  %v1002_v51 = vmul.f32 %v993_v5, %v1473_v44  ;;  %v1004_v0 = vmul.f32 %v993_v5, %v1485_v7 }
 0x3fa   : > { %v997_v52 = vrot.slane %v1228_v48, %v992_v47 }
 0x3fb   : > { %1006 = vst [vmem:[%s307_s27] sm:$0xff] %v998_v49  ;;  %1008 = vst [vmem:[%s307_s27 + $0x10] sm:$0xff] %v1000_v50 }
 0x3fc   : > { %1010 = vst [vmem:[%s307_s27 + $0x20] sm:$0xff] %v1002_v51  ;;  %1012 = vst [vmem:[%s307_s27 + $0x30] sm:$0xff] %v1004_v0  ;;  %v999_v53 = vmul.f32 %v997_v52, %v1464_v40  ;;  %v1001_v1 = vmul.f32 %v997_v52, %v1470_v43  ;;  %v1003_v54 = vmul.f32 %v997_v52, %v1476_v45 }
 0x3fd   : > { %v1005_v55 = vmul.f32 %v997_v52, %v1488_v2 }
 0x3fe   : > { %1007 = vst [vmem:[%s307_s27 + $0x8] sm:$0xff] %v999_v53  ;;  %1009 = vst [vmem:[%s307_s27 + $0x18] sm:$0xff] %v1001_v1 }
 0x3ff   : > { %1011 = vst [vmem:[%s307_s27 + $0x28] sm:$0xff] %v1003_v54  ;;  %1013 = vst [vmem:[%s307_s27 + $0x38] sm:$0xff] %v1005_v55 }
 0x400 PF: > { %s19_s24 = sadd.s32 1, %s1284_s24  }
 0x401   : > { %p16_p2 = scmp.ge.s32.totalorder %s19_s24, 4  }
 0x403   :  { %18 = sbr.rel (!%p16_p2) target bundleno = 2 (0x2), region = 89 }
 0x408   :  { %1035 = vsyncpa [#allocation3], 1 }
 0x409   :  { %1037 = vsyncpa [#allocation3 + $0x1], 1 }
 0x40a   :  { %1038 = vsyncpa [#allocation4], 1 }
 0x40b   :  { %1040 = vsyncpa [#allocation4 + $0x1], 1 }

</bundles_post_ra>
